<compile_context>
chip_gen: v5e
topology: v5e:2x2
jax: 0.10.0
libtpu: 0.0.40
codegen_flags: <defaults>
</compile_context>

<pallas_src>
import jax
import jax.numpy as jnp
from jax import lax
from jax.experimental import pallas as pl
from jax.experimental.pallas import tpu as pltpu

_EPS = 1e-5  # nn.BatchNorm1d default eps


# --------------------------------------------------------------------------
# Generation-aware VMEM budgets
# --------------------------------------------------------------------------
def _budgets():
    """Returns (tile_budget_bytes, vmem_limit_bytes or None)."""
    vmem = 0
    try:
        get_info = getattr(pltpu, "get_tpu_info", None)
        if get_info is not None:
            vmem = int(getattr(get_info(), "vmem_capacity_bytes", 0) or 0)
    except Exception:
        vmem = 0
    if vmem >= (96 << 20):   # v5e / v6e class chips (128 MiB physical VMEM)
        return 24 << 20, 64 << 20
    if vmem > 0:             # v7x class (64 MiB physical, 32 MiB scoped default)
        return 12 << 20, 32 << 20
    return 8 << 20, None     # unknown: stay under every generation's default


# --------------------------------------------------------------------------
# Fused kernel: stats + normalize in a single launch (VMEM-resident x)
# --------------------------------------------------------------------------
def _fused_bn_kernel(x_ref, g_ref, b_ref, y_ref):
    x = x_ref[...]                                       # (bs, C, S)
    inv_n = 1.0 / (x.shape[0] * x.shape[2])
    # Per-channel mean over (batch, step): lane reduce, then add across batch.
    s = jnp.sum(jnp.sum(x, axis=2, keepdims=True), axis=0, keepdims=True)
    mean = s * inv_n                                     # (1, C, 1)
    d = x - mean
    ss = jnp.sum(jnp.sum(d * d, axis=2, keepdims=True), axis=0, keepdims=True)
    var = ss * inv_n                                     # biased var (PyTorch BN)
    scale = g_ref[...] * lax.rsqrt(var + _EPS)           # (C,1)*(1,C,1)->(1,C,1)
    # y = (x - mean) * scale + beta
    y_ref[...] = d * scale + b_ref[...]


# --------------------------------------------------------------------------
# Fallback pass 1: per-channel stats + folded affine (scale, bias)
#   grid = (C_tiles, bs); x block (TC, S); reduction across the bs axis.
# --------------------------------------------------------------------------
def _stats_kernel(x_ref, g_ref, b_ref, scale_ref, bias_ref, mean_sc, m2_sc):
    b = pl.program_id(1)
    nb = pl.num_programs(1)
    S = x_ref.shape[-1]      # full step extent (never tiled -> count math valid)
    n_b = float(S)

    @pl.when(b == 0)
    def _():
        mean_sc[...] = jnp.zeros_like(mean_sc)
        m2_sc[...] = jnp.zeros_like(m2_sc)

    x = x_ref[...]                                       # (TC, S)
    mean_b = jnp.mean(x, axis=-1, keepdims=True)         # (TC, 1)
    d = x - mean_b
    m2_b = jnp.sum(d * d, axis=-1, keepdims=True)        # centered sum-of-squares

    # Chan / Welford parallel combine across batch blocks (numerically stable).
    n = (b * S).astype(jnp.float32)
    n_new = n + n_b
    delta = mean_b - mean_sc[...]
    mean_sc[...] = mean_sc[...] + delta * (n_b / n_new)
    m2_sc[...] = m2_sc[...] + m2_b + delta * delta * (n * n_b / n_new)

    @pl.when(b == nb - 1)
    def _():
        var = m2_sc[...] / n_new                         # biased variance
        scale = g_ref[...] * lax.rsqrt(var + _EPS)
        scale_ref[...] = scale
        bias_ref[...] = b_ref[...] - mean_sc[...] * scale


# --------------------------------------------------------------------------
# Fallback pass 2: lane-dense apply   y = x * scale + bias
# --------------------------------------------------------------------------
def _apply_kernel(x_ref, scale_ref, bias_ref, y_ref):
    y_ref[...] = x_ref[...] * scale_ref[...] + bias_ref[...]


def _channel_tile(C, step, budget):
    """Channel tile for the stats pass: full C when it fits (always legal),
    otherwise a multiple of 8 with a cdiv grid over channels."""
    max_tc = max(8, budget // (3 * 4 * step))    # ~double-buffered x block + slack
    if C <= max_tc:
        return C
    return max(8, (max_tc // 8) * 8)


def _lane_tile(CS, budget):
    """Lane tile (last dim) for the lane-dense apply pass."""
    max_tl = max(128, budget // 32)              # ~32 B/elem across buffered in/out
    if CS <= max_tl:
        return CS                                # full extent (always legal)
    return max(128, (max_tl // 128) * 128)


def norm_data_forward(x, gamma, beta):
    """x: (bs, c, num_joints, step). gamma/beta: (c*num_joints,)."""
    bs, c, num_joints, step = x.shape
    C = c * num_joints

    x3 = x.reshape(bs, C, step).astype(jnp.float32)      # pure view
    g2 = gamma.reshape(C, 1).astype(jnp.float32)
    b2 = beta.reshape(C, 1).astype(jnp.float32)

    tile_budget, vmem_limit = _budgets()
    x_bytes = bs * C * step * 4

    # ---------------- fused single-kernel path ----------------------------
    if 4 * x_bytes + (64 << 10) <= tile_budget:
        y3 = pl.pallas_call(
            _fused_bn_kernel,
            out_shape=jax.ShapeDtypeStruct((bs, C, step), jnp.float32),
            grid=(1,),
            in_specs=[
                pl.BlockSpec((bs, C, step), lambda i: (0, 0, 0)),
                pl.BlockSpec((C, 1), lambda i: (0, 0)),
                pl.BlockSpec((C, 1), lambda i: (0, 0)),
            ],
            out_specs=pl.BlockSpec((bs, C, step), lambda i: (0, 0, 0)),
        )(x3, g2, b2)
        return y3.reshape(bs, c, num_joints, step)

    # ---------------- tiled two-pass fallback -----------------------------
    TC = _channel_tile(C, step, tile_budget)
    num_ct = pl.cdiv(C, TC)

    stats_params = dict(dimension_semantics=("parallel", "arbitrary"))
    apply_params = dict(dimension_semantics=("parallel", "parallel"))
    if vmem_limit is not None:
        stats_params["vmem_limit_bytes"] = vmem_limit
        apply_params["vmem_limit_bytes"] = vmem_limit

    scale_c, bias_c = pl.pallas_call(
        _stats_kernel,
        out_shape=(jax.ShapeDtypeStruct((C, 1), jnp.float32),
                   jax.ShapeDtypeStruct((C, 1), jnp.float32)),
        grid=(num_ct, bs),
        in_specs=[
            pl.BlockSpec((pl.Squeezed(), TC, step), lambda ci, bi: (bi, ci, 0)),
            pl.BlockSpec((TC, 1), lambda ci, bi: (ci, 0)),
            pl.BlockSpec((TC, 1), lambda ci, bi: (ci, 0)),
        ],
        out_specs=(
            pl.BlockSpec((TC, 1), lambda ci, bi: (ci, 0)),
            pl.BlockSpec((TC, 1), lambda ci, bi: (ci, 0)),
        ),
        scratch_shapes=[pltpu.VMEM((TC, 1), jnp.float32),
                        pltpu.VMEM((TC, 1), jnp.float32)],
        compiler_params=pltpu.CompilerParams(**stats_params),
    )(x3, g2, b2)

    # Lane-dense apply: x viewed as (bs, 1, C*step) (pure view); scale / bias
    # pre-broadcast to (1, C*step) in the wrapper (tiny, ~C*step*4 bytes).
    CS = C * step
    TL = _lane_tile(CS, tile_budget)
    num_lt = pl.cdiv(CS, TL)
    x_flat = x3.reshape(bs, 1, CS)
    scale_b = jnp.broadcast_to(scale_c, (C, step)).reshape(1, CS)
    bias_b = jnp.broadcast_to(bias_c, (C, step)).reshape(1, CS)

    y_flat = pl.pallas_call(
        _apply_kernel,
        out_shape=jax.ShapeDtypeStruct((bs, 1, CS), jnp.float32),
        grid=(bs, num_lt),
        in_specs=[
            pl.BlockSpec((pl.Squeezed(), 1, TL), lambda bi, li: (bi, 0, li)),
            pl.BlockSpec((1, TL), lambda bi, li: (0, li)),
            pl.BlockSpec((1, TL), lambda bi, li: (0, li)),
        ],
        out_specs=pl.BlockSpec((pl.Squeezed(), 1, TL), lambda bi, li: (bi, 0, li)),
        compiler_params=pltpu.CompilerParams(**apply_params),
    )(x_flat, scale_b, bias_b)

    return y_flat.reshape(bs, c, num_joints, step)


def _reference(x, gamma, beta):
    bs, c, J, S = x.shape
    C = c * J
    xf = x.reshape(bs, C, S).astype(jnp.float32)
    mean = jnp.mean(xf, axis=(0, 2), keepdims=True)
    var = jnp.mean((xf - mean) ** 2, axis=(0, 2), keepdims=True)
    y = (xf - mean) / jnp.sqrt(var + _EPS)
    y = y * gamma.reshape(1, C, 1) + beta.reshape(1, C, 1)
    return y.reshape(bs, c, J, S)


if __name__ == "__main__":
    # Shapes consistent with the module: BatchNorm1d(dim*25) with dim=c=4,
    # so c * num_joints = 4 * 25 = 100 channels.
    bs, c, num_joints, step = 2, 4, 25, 16
    C = c * num_joints

    key = jax.random.PRNGKey(0)
    kx, kg, kb = jax.random.split(key, 3)
    x = jax.random.normal(kx, (bs, c, num_joints, step), dtype=jnp.float32)
    gamma = 1.0 + 0.1 * jax.random.normal(kg, (C,), dtype=jnp.float32)
    beta = 0.1 * jax.random.normal(kb, (C,), dtype=jnp.float32)

    out = jax.block_until_ready(norm_data_forward(x, gamma, beta))
    ref = _reference(x, gamma, beta)

    assert out.shape == (bs, c, num_joints, step)
    assert jnp.allclose(out, ref, atol=1e-4, rtol=1e-4)

    print("KERNEL_OK")
</pallas_src>

<mosaic_0001>
module attributes {stable_mosaic.version = 11 : i64} {
  func.func @_fused_bn_kernel(%arg0: i32, %arg1: memref<2x100x16xf32, #tpu.memory_space<vmem>>, %arg2: memref<100x1xf32, #tpu.memory_space<vmem>>, %arg3: memref<100x1xf32, #tpu.memory_space<vmem>>, %arg4: memref<2x100x16xf32, #tpu.memory_space<vmem>>) attributes {dimension_semantics = [#tpu.dimension_semantics<arbitrary>], iteration_bounds = array<i64: 1>, scalar_prefetch = 0 : i64, scratch_operands = 0 : i64, tpu.core_type = #tpu.core_type<tc>, window_params = [{pipeline_mode = #tpu.pipeline_mode<synchronous>, transform_indices = @transform_0, window_bounds = array<i64: 2, 100, 16>}, {pipeline_mode = #tpu.pipeline_mode<synchronous>, transform_indices = @transform_1, window_bounds = array<i64: 100, 1>}, {pipeline_mode = #tpu.pipeline_mode<synchronous>, transform_indices = @transform_2, window_bounds = array<i64: 100, 1>}, {pipeline_mode = #tpu.pipeline_mode<synchronous>, transform_indices = @transform_3, window_bounds = array<i64: 2, 100, 16>}]} {
    %c0 = arith.constant 0 : index
    %c0_0 = arith.constant 0 : index
    %c0_1 = arith.constant 0 : index
    %0 = vector.load %arg1[%c0, %c0_0, %c0_1] : memref<2x100x16xf32, #tpu.memory_space<vmem>>, vector<2x100x16xf32>
    %cst = arith.constant dense<0.000000e+00> : vector<2x100xf32>
    %1 = vector.multi_reduction <add>, %0, %cst [2] : vector<2x100x16xf32> to vector<2x100xf32>
    %2 = vector.shape_cast %1 : vector<2x100xf32> to vector<2x100x1xf32>
    %cst_2 = arith.constant dense<0.000000e+00> : vector<100x1xf32>
    %3 = vector.multi_reduction <add>, %2, %cst_2 [0] : vector<2x100x1xf32> to vector<100x1xf32>
    %4 = vector.shape_cast %3 : vector<100x1xf32> to vector<1x100x1xf32>
    %cst_3 = arith.constant 3.125000e-02 : f32
    %5 = vector.broadcast %cst_3 : f32 to vector<1x100x1xf32>
    %6 = arith.mulf %4, %5 : vector<1x100x1xf32>
    %7 = vector.broadcast %6 : vector<1x100x1xf32> to vector<2x100x16xf32>
    %8 = arith.subf %0, %7 : vector<2x100x16xf32>
    %9 = arith.mulf %8, %8 : vector<2x100x16xf32>
    %cst_4 = arith.constant dense<0.000000e+00> : vector<2x100xf32>
    %10 = vector.multi_reduction <add>, %9, %cst_4 [2] : vector<2x100x16xf32> to vector<2x100xf32>
    %11 = vector.shape_cast %10 : vector<2x100xf32> to vector<2x100x1xf32>
    %cst_5 = arith.constant dense<0.000000e+00> : vector<100x1xf32>
    %12 = vector.multi_reduction <add>, %11, %cst_5 [0] : vector<2x100x1xf32> to vector<100x1xf32>
    %13 = vector.shape_cast %12 : vector<100x1xf32> to vector<1x100x1xf32>
    %cst_6 = arith.constant 3.125000e-02 : f32
    %14 = vector.broadcast %cst_6 : f32 to vector<1x100x1xf32>
    %15 = arith.mulf %13, %14 : vector<1x100x1xf32>
    %c0_7 = arith.constant 0 : index
    %c0_8 = arith.constant 0 : index
    %16 = vector.load %arg2[%c0_7, %c0_8] : memref<100x1xf32, #tpu.memory_space<vmem>>, vector<100x1xf32>
    %cst_9 = arith.constant 9.99999974E-6 : f32
    %17 = vector.broadcast %cst_9 : f32 to vector<1x100x1xf32>
    %18 = arith.addf %15, %17 : vector<1x100x1xf32>
    %19 = math.rsqrt %18 : vector<1x100x1xf32>
    %20 = vector.shape_cast %16 : vector<100x1xf32> to vector<1x100x1xf32>
    %21 = arith.mulf %20, %19 : vector<1x100x1xf32>
    %22 = vector.broadcast %21 : vector<1x100x1xf32> to vector<2x100x16xf32>
    %23 = arith.mulf %8, %22 : vector<2x100x16xf32>
    %c0_10 = arith.constant 0 : index
    %c0_11 = arith.constant 0 : index
    %24 = vector.load %arg3[%c0_10, %c0_11] : memref<100x1xf32, #tpu.memory_space<vmem>>, vector<100x1xf32>
    %25 = vector.shape_cast %24 : vector<100x1xf32> to vector<1x100x1xf32>
    %26 = vector.broadcast %25 : vector<1x100x1xf32> to vector<2x100x16xf32>
    %27 = arith.addf %23, %26 : vector<2x100x16xf32>
    %c0_12 = arith.constant 0 : index
    %c0_13 = arith.constant 0 : index
    %c0_14 = arith.constant 0 : index
    %28 = vector.load %arg4[%c0_12, %c0_13, %c0_14] : memref<2x100x16xf32, #tpu.memory_space<vmem>>, vector<2x100x16xf32>
    tpu.vector_store %arg4[%c0_12, %c0_13, %c0_14], %27 {strides = array<i32>} : memref<2x100x16xf32, #tpu.memory_space<vmem>>, vector<2x100x16xf32>,
    return
  }
  func.func @transform_0(%arg0: i32) -> (i32, i32, i32) {
    %c0_i32 = arith.constant 0 : i32
    %c0_i32_0 = arith.constant 0 : i32
    %c0_i32_1 = arith.constant 0 : i32
    %c0_i32_2 = arith.constant 0 : i32
    return %c0_i32, %c0_i32_0, %c0_i32_1 : i32, i32, i32
  }
  func.func @transform_1(%arg0: i32) -> (i32, i32) {
    %c0_i32 = arith.constant 0 : i32
    %c0_i32_0 = arith.constant 0 : i32
    %c0_i32_1 = arith.constant 0 : i32
    return %c0_i32, %c0_i32_0 : i32, i32
  }
  func.func @transform_2(%arg0: i32) -> (i32, i32) {
    %c0_i32 = arith.constant 0 : i32
    %c0_i32_0 = arith.constant 0 : i32
    %c0_i32_1 = arith.constant 0 : i32
    return %c0_i32, %c0_i32_0 : i32, i32
  }
  func.func @transform_3(%arg0: i32) -> (i32, i32, i32) {
    %c0_i32 = arith.constant 0 : i32
    %c0_i32_0 = arith.constant 0 : i32
    %c0_i32_1 = arith.constant 0 : i32
    %c0_i32_2 = arith.constant 0 : i32
    return %c0_i32, %c0_i32_0, %c0_i32_1 : i32, i32, i32
  }
}

</mosaic_0001>

<bundles_post_ra>
// kernel: tpu_custom_call.1
= control target key start
LH: loop header
LB: loop body
LE: loop exit
PB: predicated region body
PF: predicated region fallthrough
CT: control target
= control target key end

     0   :  { %vm40_vm0 = vcmask 130048   ;;  %vm77_vm1 = vcmask 125952   ;;  %vm132_vm2 = vcmask 1043456   ;;  %s1530_s0 = inlined_call_operand.vmem [shape: f32[2,100,16], index: 0, kind: input, shape index: {}]   ;;  %s1531_s2 = inlined_call_operand.vmem [shape: f32[100,1], index: 2, kind: input, shape index: {}]   ;;  %s1532_s1 = inlined_call_operand.vmem [shape: f32[100,1], index: 1, kind: input, shape index: {}]   ;;  %s1533_s3 = inlined_call_operand.vmem [shape: f32[2,100,16], index: 3, kind: output, shape index: {}]  }
   0x1   :  { %v755_v0 = vld [vmem:[%s1530_s0 + $0x20] sm:$0xff]  ;;  %v760_v1 = vld [vmem:[%s1530_s0 + $0x10] sm:$0xff]  ;;  %v776_v6 = vld [vmem:[%s1530_s0 + $0x28] sm:$0xff] }
   0x2   :  { %v765_v2 = vld [vmem:[%s1530_s0] sm:$0xff]  ;;  %v53_v3 = vsel %vm40_vm0, %v755_v0, 0.0  ;;  %v47_v4 = vsel %vm40_vm0, %v760_v1, 0.0  ;;  %v781_v7 = vld [vmem:[%s1530_s0 + $0x18] sm:$0xff]  ;;  %v786_v8 = vld [vmem:[%s1530_s0 + $0x8] sm:$0xff]  ;;  %v56_v9 = vsel %vm40_vm0, %v776_v6, 0.0 }
   0x3   :  { %v41_v5 = vsel %vm40_vm0, %v765_v2, 0.0  ;;  %54 = vadd.xlane.f32.xlu2 %v53_v3  ;;  %48 = vadd.xlane.f32.xlu1 %v47_v4  ;;  %v50_v10 = vsel %vm40_vm0, %v781_v7, 0.0  ;;  %v44_v11 = vsel %vm40_vm0, %v786_v8, 0.0  ;;  %v797_v12 = vld [vmem:[%s1530_s0 + $0x40] sm:$0xff]  ;;  %v802_v13 = vld [vmem:[%s1530_s0 + $0x38] sm:$0xff]  ;;  %v807_v14 = vld [vmem:[%s1530_s0 + $0x30] sm:$0xff] }
   0x4   :  { %42 = vadd.xlane.f32.xlu0 %v41_v5  ;;  %v65_v15 = vsel %vm40_vm0, %v797_v12, 0.0  ;;  %v62_v16 = vsel %vm40_vm0, %v802_v13, 0.0  ;;  %v59_v17 = vsel %vm40_vm0, %v807_v14, 0.0  ;;  %v818_v18 = vld [vmem:[%s1530_s0 + $0x58] sm:$0xff]  ;;  %v823_v19 = vld [vmem:[%s1530_s0 + $0x50] sm:$0xff]  ;;  %v828_v20 = vld [vmem:[%s1530_s0 + $0x48] sm:$0xff] }
   0x5   :  { %v74_v21 = vsel %vm40_vm0, %v818_v18, 0.0  ;;  %v71_v22 = vsel %vm40_vm0, %v823_v19, 0.0  ;;  %v68_v23 = vsel %vm40_vm0, %v828_v20, 0.0  ;;  %v839_v24 = vld [vmem:[%s1530_s0 + $0x70] sm:$0xff]  ;;  %v844_v25 = vld [vmem:[%s1530_s0 + $0x68] sm:$0xff]  ;;  %v865_v31 = vld [vmem:[%s1530_s0 + $0x80] sm:$0xff] }
   0x6   :  { %v849_v26 = vld [vmem:[%s1530_s0 + $0x60] sm:$0xf]  ;;  %v84_v27 = vsel %vm40_vm0, %v839_v24, 0.0  ;;  %v81_v28 = vsel %vm40_vm0, %v844_v25, 0.0  ;;  %v860_v30 = vld [vmem:[%s1530_s0 + $0x88] sm:$0xff]  ;;  %v870_v32 = vld [vmem:[%s1530_s0 + $0x78] sm:$0xff] }
   0x7   :  { %v78_v29 = vsel %vm77_vm1, %v849_v26, 0.0  ;;  %v93_v33 = vsel %vm40_vm0, %v860_v30, 0.0  ;;  %v90_v34 = vsel %vm40_vm0, %v865_v31, 0.0  ;;  %v87_v35 = vsel %vm40_vm0, %v870_v32, 0.0  ;;  %v881_v36 = vld [vmem:[%s1530_s0 + $0xa0] sm:$0xff]  ;;  %v886_v37 = vld [vmem:[%s1530_s0 + $0x98] sm:$0xff] }
   0x8   :  { %v891_v38 = vld [vmem:[%s1530_s0 + $0x90] sm:$0xff]  ;;  %v102_v39 = vsel %vm40_vm0, %v881_v36, 0.0  ;;  %v99_v40 = vsel %vm40_vm0, %v886_v37, 0.0  ;;  %v902_v42 = vld [vmem:[%s1530_s0 + $0xb8] sm:$0xff]  ;;  %v912_v44 = vld [vmem:[%s1530_s0 + $0xa8] sm:$0xff] }
   0x9   :  { %v96_v41 = vsel %vm40_vm0, %v891_v38, 0.0  ;;  %v907_v43 = vld [vmem:[%s1530_s0 + $0xb0] sm:$0xff]  ;;  %v111_v45 = vsel %vm40_vm0, %v902_v42, 0.0  ;;  %v105_v47 = vsel %vm40_vm0, %v912_v44, 0.0  ;;  %v923_v48 = vld [vmem:[%s1530_s0 + $0xc8] sm:$0xf] }
   0xa   :  { %v108_v46 = vsel %vm40_vm0, %v907_v43, 0.0  ;;  %v928_v49 = vld [vmem:[%s1530_s0 + $0xc0] sm:$0xff]  ;;  %v117_v50 = vsel %vm77_vm1, %v923_v48, 0.0 }
   0xb   :  { %57 = vadd.xlane.f32.xlu2 %v56_v9  ;;  %51 = vadd.xlane.f32.xlu1 %v50_v10  ;;  %v114_v51 = vsel %vm40_vm0, %v928_v49, 0.0 }
   0xc   :  { %45 = vadd.xlane.f32.xlu0 %v44_v11 }
  0x13   :  { %66 = vadd.xlane.f32.xlu2 %v65_v15  ;;  %63 = vadd.xlane.f32.xlu1 %v62_v16 }
  0x14   :  { %60 = vadd.xlane.f32.xlu0 %v59_v17 }
  0x1b   :  { %75 = vadd.xlane.f32.xlu2 %v74_v21  ;;  %72 = vadd.xlane.f32.xlu1 %v71_v22 }
  0x1c   :  { %69 = vadd.xlane.f32.xlu0 %v68_v23 }
  0x23   :  { %85 = vadd.xlane.f32.xlu2 %v84_v27  ;;  %82 = vadd.xlane.f32.xlu1 %v81_v28 }
  0x24   :  { %79 = vadd.xlane.f32.xlu0 %v78_v29 }
  0x2b   :  { %94 = vadd.xlane.f32.xlu2 %v93_v33  ;;  %91 = vadd.xlane.f32.xlu1 %v90_v34 }
  0x2c   :  { %88 = vadd.xlane.f32.xlu0 %v87_v35 }
  0x33   :  { %103 = vadd.xlane.f32.xlu2 %v102_v39  ;;  %100 = vadd.xlane.f32.xlu1 %v99_v40 }
  0x34   :  { %97 = vadd.xlane.f32.xlu0 %v96_v41 }
  0x3b   :  { %112 = vadd.xlane.f32.xlu2 %v111_v45  ;;  %109 = vadd.xlane.f32.xlu1 %v108_v46 }
  0x3c   :  { %106 = vadd.xlane.f32.xlu0 %v105_v47 }
  0x43   :  { %118 = vadd.xlane.f32.xlu1 %v117_v50 }
  0x44   :  { %115 = vadd.xlane.f32.xlu0 %v114_v51 }
  0x76   :  { %v55_v52 = vpop.xlane.xlu2 %54  ;;  %v49_v53 = vpop.xlane.xlu1 %48 }
  0x77   :  { %v43_v54 = vpop.xlane.xlu0 %42 }
  0x7e   :  { %v58_v55 = vpop.xlane.xlu2 %57  ;;  %v52_v56 = vpop.xlane.xlu1 %51 }
  0x7f   :  { %v46_v57 = vpop.xlane.xlu0 %45 }
  0x86   :  { %v934_v58 = vpop.xlane.xlu2 %66  ;;  %v64_v59 = vpop.xlane.xlu1 %63 }
  0x87   :  { %v61_v60 = vpop.xlane.xlu0 %60 }
  0x8e   :  { %v936_v61 = vpop.xlane.xlu2 %75  ;;  %v73_v62 = vpop.xlane.xlu1 %72 }
  0x8f   :  { %v70_v63 = vpop.xlane.xlu0 %69 }
  0x96   :  { %v86_v3 = vpop.xlane.xlu2 %85  ;;  %v83_v4 = vpop.xlane.xlu1 %82 }
  0x97   :  { %v121_v5 = vadd.f32 %v86_v3, %v46_v57  ;;  %v120_v9 = vadd.f32 %v83_v4, %v43_v54  ;;  %v938_v10 = vpop.xlane.xlu0 %79 }
  0x99   :  { %v940_v11 = vmul.f32 0.03125, %v121_v5  ;;  %v942_v15 = vmul.f32 0.03125, %v120_v9 }
  0x9b   :  { %v946_v16 = vsub.f32 %v786_v8, %v940_v11  ;;  %v950_v17 = vsub.f32 %v765_v2, %v942_v15 }
  0x9d   :  { %v175_v21 = vmul.f32 %v950_v17, %v950_v17  ;;  %v176_v22 = vmul.f32 %v946_v16, %v946_v16 }
  0x9e   :  { %v95_v23 = vpop.xlane.xlu2 %94  ;;  %v92_v27 = vpop.xlane.xlu1 %91 }
  0x9f   :  { %v124_v28 = vadd.f32 %v95_v23, %v55_v52  ;;  %v123_v29 = vadd.f32 %v92_v27, %v52_v56  ;;  %v89_v33 = vpop.xlane.xlu0 %88  ;;  %v201_v34 = vsel %vm40_vm0, %v175_v21, 0.0  ;;  %v204_v8 = vsel %vm40_vm0, %v176_v22, 0.0 }
  0xa0   :  { %v122_v35 = vadd.f32 %v89_v33, %v49_v53  ;;  %202 = vadd.xlane.f32.xlu2 %v201_v34  ;;  %205 = vadd.xlane.f32.xlu0 %v204_v8 }
  0xa1   :  { %v958_v2 = vmul.f32 0.03125, %v124_v28  ;;  %v960_v39 = vmul.f32 0.03125, %v123_v29 }
  0xa2   :  { %v138_v40 = vmul.f32 0.03125, %v122_v35 }
  0xa3   :  { %v964_v41 = vsub.f32 %v755_v0, %v958_v2  ;;  %v968_v45 = vsub.f32 %v781_v7, %v960_v39 }
  0xa4   :  { %v971_v46 = vsub.f32 %v760_v1, %v138_v40 }
  0xa5   :  { %v178_v47 = vmul.f32 %v968_v45, %v968_v45  ;;  %v179_v50 = vmul.f32 %v964_v41, %v964_v41 }
  0xa6   :  { %v104_v51 = vpop.xlane.xlu2 %103  ;;  %v101_v52 = vpop.xlane.xlu1 %100  ;;  %v177_v53 = vmul.f32 %v971_v46, %v971_v46 }
  0xa7   :  { %v127_v0 = vadd.f32 %v104_v51, %v64_v59  ;;  %v126_v54 = vadd.f32 %v101_v52, %v61_v60  ;;  %v98_v56 = vpop.xlane.xlu0 %97  ;;  %v210_v7 = vsel %vm40_vm0, %v178_v47, 0.0  ;;  %v213_v57 = vsel %vm40_vm0, %v179_v50, 0.0 }
  0xa8   :  { %v125_v1 = vadd.f32 %v98_v56, %v58_v55  ;;  %211 = vadd.xlane.f32.xlu2 %v210_v7  ;;  %214 = vadd.xlane.f32.xlu0 %v213_v57  ;;  %v207_v3 = vsel %vm40_vm0, %v177_v53, 0.0 }
  0xa9   :  { %v982_v4 = vmul.f32 0.03125, %v127_v0  ;;  %v142_v5 = vmul.f32 0.03125, %v126_v54  ;;  %208 = vadd.xlane.f32.xlu1 %v207_v3  ;;  %v1024_v0 = vsub.f32 %v844_v25, %v942_v15 }
  0xaa   :  { %v141_v9 = vmul.f32 0.03125, %v125_v1 }
  0xab   :  { %v986_v21 = vsub.f32 %v802_v13, %v982_v4  ;;  %v989_v59 = vsub.f32 %v807_v14, %v142_v5  ;;  %v188_v25 = vmul.f32 %v1024_v0, %v1024_v0 }
  0xac   :  { %v992_v60 = vsub.f32 %v776_v6, %v141_v9  ;;  %v1047_v1 = vsub.f32 %v891_v38, %v141_v9  ;;  %v1063_v9 = vsub.f32 %v886_v37, %v142_v5 }
  0xad   :  { %v182_v55 = vmul.f32 %v986_v21, %v986_v21  ;;  %v181_v22 = vmul.f32 %v989_v59, %v989_v59  ;;  %v240_v3 = vsel %vm40_vm0, %v188_v25, 0.0 }
  0xae   :  { %v113_v23 = vpop.xlane.xlu2 %112  ;;  %v110_v27 = vpop.xlane.xlu1 %109  ;;  %v180_v28 = vmul.f32 %v992_v60, %v992_v60  ;;  %v193_v38 = vmul.f32 %v1047_v1, %v1047_v1  ;;  %v194_v37 = vmul.f32 %v1063_v9, %v1063_v9 }
  0xaf   :  { %v130_v29 = vadd.f32 %v113_v23, %v73_v62  ;;  %v129_v13 = vadd.f32 %v110_v27, %v70_v63  ;;  %v107_v33 = vpop.xlane.xlu0 %106  ;;  %v222_v14 = vsel %vm40_vm0, %v182_v55, 0.0  ;;  %v219_v34 = vsel %vm40_vm0, %v181_v22, 0.0 }
  0xb0   :  { %v128_v6 = vadd.f32 %v107_v33, %v934_v58  ;;  %223 = vadd.xlane.f32.xlu0 %v222_v14  ;;  %220 = vadd.xlane.f32.xlu2 %v219_v34  ;;  %v216_v8 = vsel %vm40_vm0, %v180_v28, 0.0  ;;  %v1053_v22 = vsub.f32 %v839_v24, %v940_v11  ;;  %v255_v23 = vsel %vm40_vm0, %v193_v38, 0.0  ;;  %v572_v38 = vld [vmem:[%s1531_s2 + $0x28] sm:$0xff] }
  0xb1   :  { %v1004_v35 = vmul.f32 0.03125, %v130_v29  ;;  %v145_v47 = vmul.f32 0.03125, %v129_v13  ;;  %217 = vadd.xlane.f32.xlu1 %v216_v8  ;;  %v1072_v27 = vsub.f32 %v860_v30, %v958_v2  ;;  %v133_v30 = vsel %vm132_vm2, %v938_v10, 0.0 }
  0xb2   :  { %v144_v50 = vmul.f32 0.03125, %v128_v6  ;;  %v258_v2 = vsel %vm40_vm0, %v194_v37, 0.0  ;;  %v1094_v8 = vsub.f32 %v881_v36, %v982_v4  ;;  %v575_v37 = vld [vmem:[%s1531_s2 + $0x40] sm:$0xff] }
  0xb3   :  { %v1008_v62 = vsub.f32 %v823_v19, %v1004_v35  ;;  %v1011_v63 = vsub.f32 %v828_v20, %v145_v47  ;;  %v1027_v19 = vsub.f32 %v870_v32, %v138_v40  ;;  %v192_v13 = vmul.f32 %v1072_v27, %v1072_v27 }
  0xb4   :  { %v1014_v51 = vsub.f32 %v797_v12, %v144_v50  ;;  %v1066_v24 = vsub.f32 %v912_v44, %v144_v50  ;;  %v1086_v33 = vsub.f32 %v907_v43, %v145_v47 }
  0xb5   :  { %v185_v58 = vmul.f32 %v1008_v62, %v1008_v62  ;;  %v184_v52 = vmul.f32 %v1011_v63, %v1011_v63  ;;  %v190_v32 = vmul.f32 %v1027_v19, %v1027_v19  ;;  %v252_v50 = vsel %vm40_vm0, %v192_v13, 0.0 }
  0xb6   :  { %v183_v53 = vmul.f32 %v1014_v51, %v1014_v51  ;;  %v119_v29 = vpop.xlane.xlu1 %118  ;;  %v196_v44 = vmul.f32 %v1066_v24, %v1066_v24  ;;  %v197_v43 = vmul.f32 %v1086_v33, %v1086_v33 }
  0xb7   :  { %v116_v20 = vpop.xlane.xlu0 %115  ;;  %v231_v12 = vsel %vm40_vm0, %v185_v58, 0.0  ;;  %v228_v54 = vsel %vm40_vm0, %v184_v52, 0.0  ;;  %v246_v55 = vsel %vm40_vm0, %v190_v32, 0.0  ;;  %v134_v5 = vsel %vm132_vm2, %v119_v29, 0.0  ;;  %v569_v32 = vld [vmem:[%s1531_s2 + $0x10] sm:$0xff] }
  0xb8   :  { %v131_v56 = vadd.f32 %v116_v20, %v936_v61  ;;  %232 = vadd.xlane.f32.xlu0 %v231_v12  ;;  %229 = vadd.xlane.f32.xlu2 %v228_v54  ;;  %v225_v7 = vsel %vm40_vm0, %v183_v53, 0.0  ;;  %v1044_v61 = vsub.f32 %v865_v31, %v960_v39  ;;  %v189_v39 = vmul.f32 %v1053_v22, %v1053_v22 }
  0xb9   :  { %226 = vadd.xlane.f32.xlu1 %v225_v7  ;;  %v135_v14 = vadd.f32 %v134_v5, %v133_v30  ;;  %v264_v6 = vsel %vm40_vm0, %v196_v44, 0.0  ;;  %v267_v4 = vsel %vm40_vm0, %v197_v43, 0.0  ;;  %v1113_v53 = vsub.f32 %v902_v42, %v1004_v35  ;;  %v568_v35 = vld [vmem:[%s1531_s2 + $0x8] sm:$0xff]  ;;  %v573_v44 = vld [vmem:[%s1531_s2 + $0x30] sm:$0xff] }
  0xba   :  { %v147_v57 = vmul.f32 0.03125, %v131_v56  ;;  %v191_v31 = vmul.f32 %v1044_v61, %v1044_v61  ;;  %v243_v28 = vsel %vm40_vm0, %v189_v39, 0.0  ;;  %v731_v7 = vmov 0   ;;  %v570_v39 = vld [vmem:[%s1531_s2 + $0x18] sm:$0xff] }
  0xbb   :  { %v148_v10 = vmul.f32 0.03125, %v135_v14  ;;  %v198_v12 = vmul.f32 %v1113_v53, %v1113_v53  ;;  %703 = vset.pattern.permute.xlu1 %v731_v7  ;;  %704 = vset.pattern.permute.xlu0 %v731_v7 }
  0xbc   :  { %v1038_v15 = vsub.f32 %v818_v18, %v147_v57  ;;  %v249_v11 = vsel %vm40_vm0, %v191_v31, 0.0  ;;  %v1089_v34 = vsub.f32 %v928_v49, %v147_v57  ;;  %v195_v49 = vmul.f32 %v1094_v8, %v1094_v8  ;;  %702 = vset.pattern.permute.xlu2 %v731_v7 }
  0xbd   :  { %v1104_v58 = vsub.f32 %v849_v26, %v148_v10  ;;  %v1107_v36 = vsub.f32 %v923_v48, %v148_v10  ;;  %v270_v42 = vsel %vm40_vm0, %v198_v12, 0.0 }
  0xbe   :  { %v186_v40 = vmul.f32 %v1038_v15, %v1038_v15  ;;  %v199_v47 = vmul.f32 %v1089_v34, %v1089_v34  ;;  %v261_v20 = vsel %vm40_vm0, %v195_v49, 0.0 }
  0xbf   :  { %v200_v26 = vmul.f32 %v1107_v36, %v1107_v36  ;;  %v187_v48 = vmul.f32 %v1104_v58, %v1104_v58 }
  0xc0   :  { %241 = vadd.xlane.f32.xlu0 %v240_v3  ;;  %247 = vadd.xlane.f32.xlu2 %v246_v55  ;;  %v234_v18 = vsel %vm40_vm0, %v186_v40, 0.0  ;;  %v273_v52 = vsel %vm40_vm0, %v199_v47, 0.0  ;;  %v567_v40 = vld [vmem:[%s1531_s2] sm:$0xff] }
  0xc1   :  { %235 = vadd.xlane.f32.xlu1 %v234_v18  ;;  %v276_v54 = vsel %vm77_vm1, %v200_v26, 0.0  ;;  %v237_v56 = vsel %vm77_vm1, %v187_v48, 0.0  ;;  %v571_v3 = vld [vmem:[%s1531_s2 + $0x20] sm:$0xff] }
  0xc8   :  { %250 = vadd.xlane.f32.xlu0 %v249_v11  ;;  %256 = vadd.xlane.f32.xlu2 %v255_v23  ;;  %v574_v11 = vld [vmem:[%s1531_s2 + $0x38] sm:$0xff] }
  0xc9   :  { %244 = vadd.xlane.f32.xlu1 %v243_v28 }
  0xd0   :  { %259 = vadd.xlane.f32.xlu0 %v258_v2  ;;  %265 = vadd.xlane.f32.xlu2 %v264_v6  ;;  %v576_v2 = vld [vmem:[%s1531_s2 + $0x48] sm:$0xff] }
  0xd1   :  { %253 = vadd.xlane.f32.xlu1 %v252_v50 }
  0xd8   :  { %268 = vadd.xlane.f32.xlu0 %v267_v4  ;;  %274 = vadd.xlane.f32.xlu2 %v273_v52 }
  0xd9   :  { %262 = vadd.xlane.f32.xlu1 %v261_v20 }
  0xe0   :  { %277 = vadd.xlane.f32.xlu0 %v276_v54  ;;  %238 = vadd.xlane.f32.xlu2 %v237_v56 }
  0xe1   :  { %271 = vadd.xlane.f32.xlu1 %v270_v42 }
  0xf4   :  { %592 = vperm.xlu0 %704, %v569_v32  }
  0xf8   :  { %582 = vperm.xlu2 %702, %v567_v40  }
  0xfa   :  { %587 = vperm.xlu1 %703, %v568_v35  }
  0xfc   :  { %607 = vperm.xlu0 %704, %v572_v38  }
 0x100   :  { %597 = vperm.xlu2 %702, %v570_v39  }
 0x102   :  { %602 = vperm.xlu1 %703, %v571_v3  }
 0x104   :  { %622 = vperm.xlu0 %704, %v575_v37  }
 0x108   :  { %612 = vperm.xlu2 %702, %v573_v44  }
 0x10a   :  { %617 = vperm.xlu1 %703, %v574_v11  }
 0x110   :  { %627 = vperm.xlu2 %702, %v576_v2  }
 0x113   :  { %v203_v57 = vpop.xlane.xlu2 %202  ;;  %v206_v25 = vpop.xlane.xlu0 %205 }
 0x11b   :  { %v212_v55 = vpop.xlane.xlu2 %211  ;;  %v215_v18 = vpop.xlane.xlu0 %214 }
 0x11c   :  { %v209_v31 = vpop.xlane.xlu1 %208 }
 0x123   :  { %v221_v23 = vpop.xlane.xlu2 %220  ;;  %v1146_v28 = vpop.xlane.xlu0 %223 }
 0x124   :  { %v218_v29 = vpop.xlane.xlu1 %217 }
 0x12b   :  { %v1154_v5 = vpop.xlane.xlu2 %229  ;;  %v1156_v13 = vpop.xlane.xlu0 %232 }
 0x12c   :  { %v227_v30 = vpop.xlane.xlu1 %226 }
 0x133   :  { %v248_v14 = vpop.xlane.xlu2 %247  ;;  %v242_v6 = vpop.xlane.xlu0 %241 }
 0x134   :  { %v281_v50 = vadd.f32 %v248_v14, %v209_v31  ;;  %v236_v10 = vpop.xlane.xlu1 %235  ;;  %v279_v43 = vadd.f32 %v242_v6, %v203_v57 }
 0x136   :  { %v296_v47 = vmul.f32 0.03125, %v281_v50  ;;  %v294_v49 = vmul.f32 0.03125, %v279_v43 }
 0x138   :  { %v322_v4 = vadd.f32 1e-05, %v296_v47  ;;  %v1161_v52 = vadd.f32 1e-05, %v294_v49 }
 0x13a   :  { %705 = vrsqrt.f32 %v322_v4  ;;  %vm359_vm4 = vweird.f32 %v322_v4  ;;  %vm339_vm7 = vweird.f32 %v1161_v52 }
 0x13b   :  { %707 = vrsqrt.f32 %v1161_v52  ;;  %v257_v20 = vpop.xlane.xlu2 %256  ;;  %v251_v26 = vpop.xlane.xlu0 %250 }
 0x13c   :  { %v284_v48 = vadd.f32 %v257_v20, %v218_v29  ;;  %v245_v12 = vpop.xlane.xlu1 %244  ;;  %v282_v54 = vadd.f32 %v251_v26, %v212_v55 }
 0x13d   :  { %v280_v56 = vadd.f32 %v245_v12, %v206_v25 }
 0x13e   :  { %v297_v42 = vmul.f32 0.03125, %v282_v54  ;;  %v299_v35 = vmul.f32 0.03125, %v284_v48 }
 0x13f   :  { %v295_v7 = vmul.f32 0.03125, %v280_v56 }
 0x140   :  { %v706_v32 = vpop.eup %705  ;;  %v1164_v40 = vadd.f32 1e-05, %v297_v42  ;;  %v1172_v11 = vadd.f32 1e-05, %v299_v35 }
 0x141   :  { %v1166_v57 = vpop.eup %707  ;;  %v354_v3 = vmul.f32 %v706_v32, %v322_v4  ;;  %v1168_v31 = vadd.f32 1e-05, %v295_v7  ;;  %vm360_vm3 = vweird.f32 %v706_v32 }
 0x142   :  { %v334_v38 = vmul.f32 %v1166_v57, %v1161_v52  ;;  %vm361_vm5 = vmor %vm359_vm4, %vm360_vm3  ;;  %vm340_vm6 = vweird.f32 %v1166_v57 }
 0x143   :  { %v355_v39 = vmul.f32 %v706_v32, %v354_v3  ;;  %709 = vrsqrt.f32 %v1168_v31  ;;  %v266_v25 = vpop.xlane.xlu2 %265  ;;  %v260_v55 = vpop.xlane.xlu0 %259  ;;  %vm1217_vm8 = vmor %vm339_vm7, %vm340_vm6  ;;  %vm349_vm9 = vweird.f32 %v1168_v31 }
 0x144   :  { %v335_v29 = vmul.f32 %v1166_v57, %v334_v38  ;;  %711 = vrsqrt.f32 %v1164_v40  ;;  %v287_v37 = vadd.f32 %v266_v25, %v227_v30  ;;  %v254_v44 = vpop.xlane.xlu1 %253  ;;  %v285_v2 = vadd.f32 %v260_v55, %v221_v23  ;;  %v309_v55 = vld [vmem:[%s1532_s1 + $0x10] sm:$0xff] }
 0x145   :  { %v356_v14 = vmul.f32 0.5, %v355_v39  ;;  %v283_v6 = vadd.f32 %v254_v44, %v215_v18  ;;  %713 = vrsqrt.f32 %v1172_v11 }
 0x146   :  { %v302_v50 = vmul.f32 0.03125, %v287_v37  ;;  %v300_v43 = vmul.f32 0.03125, %v285_v2  ;;  %v336_v49 = vmul.f32 0.5, %v335_v29 }
 0x147   :  { %v357_v47 = vsub.f32 1.5, %v356_v14  ;;  %v298_v20 = vmul.f32 0.03125, %v283_v6 }
 0x148   :  { %v1178_v26 = vadd.f32 1e-05, %v300_v43  ;;  %v1188_v18 = vadd.f32 1e-05, %v302_v50  ;;  %v337_v56 = vsub.f32 1.5, %v336_v49 }
 0x149   :  { %v1180_v48 = vpop.eup %709  ;;  %v1182_v12 = vadd.f32 1e-05, %v298_v20  ;;  %v358_v30 = vmul.f32 %v706_v32, %v357_v47 }
 0x14a   :  { %v1184_v54 = vpop.eup %711  ;;  %v344_v23 = vmul.f32 %v1180_v48, %v1168_v31  ;;  %vm350_vm10 = vweird.f32 %v1180_v48 }
 0x14b   :  { %v364_v42 = vmul.f32 %v1184_v54, %v1164_v40  ;;  %715 = vrsqrt.f32 %v1182_v12  ;;  %v275_v35 = vpop.xlane.xlu2 %274  ;;  %v269_v7 = vpop.xlane.xlu0 %268  ;;  %v362_v44 = vsel %vm361_vm5, %v706_v32, %v358_v30  ;;  %vm1253_vm11 = vmor %vm349_vm9, %vm350_vm10  ;;  %vm370_vm12 = vweird.f32 %v1184_v54 }
 0x14c   :  { %v345_v3 = vmul.f32 %v1180_v48, %v344_v23  ;;  %717 = vrsqrt.f32 %v1178_v26  ;;  %v263_v38 = vpop.xlane.xlu1 %262  ;;  %v290_v39 = vadd.f32 %v275_v35, %v236_v10  ;;  %v1200_v29 = vpop.eup %713  ;;  %v288_v4 = vadd.f32 %v269_v7, %v1154_v5  ;;  %v307_v35 = vld [vmem:[%s1532_s1] sm:$0xff] }
 0x14d   :  { %v286_v25 = vadd.f32 %v263_v38, %v1146_v28  ;;  %v365_v37 = vmul.f32 %v1184_v54, %v364_v42  ;;  %719 = vrsqrt.f32 %v1188_v18  ;;  %v338_v10 = vmul.f32 %v1166_v57, %v337_v56 }
 0x14e   :  { %v346_v2 = vmul.f32 0.5, %v345_v3  ;;  %v305_v14 = vmul.f32 0.03125, %v290_v39  ;;  %v303_v50 = vmul.f32 0.03125, %v288_v4  ;;  %v465_v28 = vmul.f32 %v362_v44, %v309_v55 }
 0x14f   :  { %v301_v6 = vmul.f32 0.03125, %v286_v25  ;;  %v384_v47 = vmul.f32 %v1200_v29, %v1172_v11  ;;  %v366_v32 = vmul.f32 0.5, %v365_v37  ;;  %v342_v7 = vsel %vm1217_vm8, %v1166_v57, %v338_v10 }
 0x150   :  { %v1211_v49 = vadd.f32 1e-05, %v305_v14  ;;  %v1225_v52 = vadd.f32 1e-05, %v303_v50  ;;  %488 = vperm.xlu0 %704, %v465_v28   ;;  %v347_v56 = vsub.f32 1.5, %v346_v2  ;;  %v463_v44 = vmul.f32 %v342_v7, %v307_v35 }
 0x151   :  { %v1206_v43 = vpop.eup %715  ;;  %v1223_v30 = vadd.f32 1e-05, %v301_v6  ;;  %v385_v37 = vmul.f32 %v1200_v29, %v384_v47  ;;  %v367_v6 = vsub.f32 1.5, %v366_v32  ;;  %vm379_vm14 = vweird.f32 %v1182_v12 }
 0x152   :  { %v1213_v20 = vpop.eup %717  ;;  %v374_v23 = vmul.f32 %v1206_v43, %v1182_v12  ;;  %721 = vrsqrt.f32 %v1211_v49  ;;  %v348_v28 = vmul.f32 %v1180_v48, %v347_v56  ;;  %478 = vperm.xlu1 %703, %v463_v44   ;;  %vm380_vm13 = vweird.f32 %v1206_v43 }
 0x153   :  { %v394_v42 = vmul.f32 %v1213_v20, %v1178_v26  ;;  %v239_v3 = vpop.xlane.xlu2 %238  ;;  %v1236_v38 = vpop.eup %719  ;;  %723 = vrsqrt.f32 %v1223_v30  ;;  %v386_v7 = vmul.f32 0.5, %v385_v37  ;;  %vm381_vm15 = vmor %vm379_vm14, %vm380_vm13  ;;  %vm400_vm4 = vweird.f32 %v1213_v20 }
 0x154   :  { %v375_v39 = vmul.f32 %v1206_v43, %v374_v23  ;;  %v272_v25 = vpop.xlane.xlu1 %271  ;;  %v278_v55 = vpop.xlane.xlu0 %277  ;;  %725 = vrsqrt.f32 %v1225_v52  ;;  %v291_v2 = vsel %vm132_vm2, %v239_v3, 0.0  ;;  %v414_v10 = vmul.f32 %v1236_v38, %v1188_v18 }
 0x155   :  { %v395_v4 = vmul.f32 %v1213_v20, %v394_v42  ;;  %v289_v14 = vadd.f32 %v272_v25, %v1156_v13  ;;  %v292_v50 = vsel %vm132_vm2, %v278_v55, 0.0  ;;  %v308_v13 = vld [vmem:[%s1532_s1 + $0x8] sm:$0xff]  ;;  %v352_v31 = vsel %vm1253_vm11, %v1180_v48, %v348_v28 }
 0x156   :  { %v376_v57 = vmul.f32 0.5, %v375_v39  ;;  %v293_v35 = vadd.f32 %v292_v50, %v291_v2  ;;  %v415_v55 = vmul.f32 %v1236_v38, %v414_v10  ;;  %v368_v48 = vmul.f32 %v1184_v54, %v367_v6 }
 0x157   :  { %v396_v23 = vmul.f32 0.5, %v395_v4  ;;  %v304_v42 = vmul.f32 0.03125, %v289_v14  ;;  %v464_v4 = vmul.f32 %v352_v31, %v308_v13  ;;  %v387_v50 = vsub.f32 1.5, %v386_v7  ;;  %v315_v7 = vld [vmem:[%s1532_s1 + $0x40] sm:$0xff] }
 0x158   :  { %v377_v5 = vsub.f32 1.5, %v376_v57  ;;  %v1260_v32 = vpop.eup %721  ;;  %v306_v39 = vmul.f32 0.03125, %v293_v35  ;;  %v311_v57 = vld [vmem:[%s1532_s1 + $0x20] sm:$0xff]  ;;  %vm369_vm2 = vweird.f32 %v1164_v40  ;;  %v310_v40 = vld [vmem:[%s1532_s1 + $0x18] sm:$0xff]  ;;  %vm399_vm5 = vweird.f32 %v1178_v26  ;;  %v313_v26 = vld [vmem:[%s1532_s1 + $0x30] sm:$0xff] }
 0x159   :  { %v1267_v56 = vpop.eup %723  ;;  %v1270_v3 = vadd.f32 1e-05, %v304_v42  ;;  %v397_v2 = vsub.f32 1.5, %v396_v23  ;;  %483 = vperm.xlu2 %702, %v464_v4   ;;  %vm1288_vm3 = vmor %vm369_vm2, %vm370_vm12  ;;  %v444_v23 = vmul.f32 %v1260_v32, %v1211_v49  ;;  %vm390_vm6 = vweird.f32 %v1200_v29 }
 0x15a   :  { %v726_v25 = vpop.eup %725  ;;  %v378_v44 = vmul.f32 %v1206_v43, %v377_v5  ;;  %v404_v12 = vmul.f32 %v1267_v56, %v1223_v30  ;;  %v1282_v14 = vadd.f32 1e-05, %v306_v39  ;;  %v416_v5 = vmul.f32 0.5, %v415_v55  ;;  %vm1308_vm7 = vmor %vm399_vm5, %vm400_vm4 }
 0x15b   :  { %v424_v37 = vmul.f32 %v726_v25, %v1225_v52  ;;  %727 = vrsqrt.f32 %v1270_v3  ;;  %v372_v35 = vsel %vm1288_vm3, %v1184_v54, %v368_v48  ;;  %v398_v13 = vmul.f32 %v1213_v20, %v397_v2 }
 0x15c   :  { %v382_v10 = vsel %vm381_vm15, %v1206_v43, %v378_v44  ;;  %729 = vrsqrt.f32 %v1282_v14  ;;  %v405_v43 = vmul.f32 %v1267_v56, %v404_v12  ;;  %vm429_vm8 = vweird.f32 %v1225_v52  ;;  %v316_v52 = vld [vmem:[%s1532_s1 + $0x48] sm:$0xff] }
 0x15d   :  { %v425_v28 = vmul.f32 %v726_v25, %v424_v37  ;;  %v467_v47 = vmul.f32 %v382_v10, %v311_v57  ;;  %vm430_vm9 = vweird.f32 %v726_v25  ;;  %v417_v55 = vsub.f32 1.5, %v416_v5 }
 0x15e   :  { %v445_v4 = vmul.f32 %v1260_v32, %v444_v23  ;;  %v466_v54 = vmul.f32 %v372_v35, %v310_v40  ;;  %v402_v57 = vsel %vm1308_vm7, %v1213_v20, %v398_v13  ;;  %v406_v44 = vmul.f32 0.5, %v405_v43  ;;  %vm431_vm10 = vmor %vm429_vm8, %vm430_vm9 }
 0x15f   :  { %v426_v42 = vmul.f32 0.5, %v425_v28  ;;  %498 = vperm.xlu1 %703, %v467_v47   ;;  %v388_v2 = vmul.f32 %v1200_v29, %v387_v50  ;;  %vm389_vm11 = vweird.f32 %v1172_v11  ;;  %v469_v28 = vmul.f32 %v402_v57, %v313_v26  ;;  %v319_v26 = vld [vmem:[%s1532_s1 + $0x60] sm:$0xf] }
 0x160   :  { %vm1330_vm12 = vmor %vm389_vm11, %vm390_vm6  ;;  %vm420_vm13 = vweird.f32 %v1236_v38  ;;  %v446_v50 = vmul.f32 0.5, %v445_v4  ;;  %v418_v5 = vmul.f32 %v1236_v38, %v417_v55  ;;  %v407_v23 = vsub.f32 1.5, %v406_v44  ;;  %v579_v47 = vld [vmem:[%s1531_s2 + $0x60] sm:$0xf] }
 0x161   :  { %v1305_v31 = vpop.eup %727  ;;  %v427_v39 = vsub.f32 1.5, %v426_v42  ;;  %493 = vperm.xlu2 %702, %v466_v54   ;;  %v392_v42 = vsel %vm1330_vm12, %v1200_v29, %v388_v2  ;;  %vm419_vm14 = vweird.f32 %v1188_v18  ;;  %vm410_vm2 = vweird.f32 %v1267_v56 }
 0x162   :  { %v434_v48 = vmul.f32 %v1305_v31, %v1270_v3  ;;  %v730_v37 = vpop.eup %729  ;;  %vm421_vm15 = vmor %vm419_vm14, %vm420_vm13  ;;  %v447_v35 = vsub.f32 1.5, %v446_v50  ;;  %v408_v29 = vmul.f32 %v1267_v56, %v407_v23  ;;  %vm409_vm4 = vweird.f32 %v1223_v30  ;;  %v314_v30 = vld [vmem:[%s1532_s1 + $0x38] sm:$0xff]  ;;  %v583_v50 = vpop.permute.xlu2 %582 }
 0x163   :  { %v428_v12 = vmul.f32 %v726_v25, %v427_v39  ;;  %v454_v10 = vmul.f32 %v730_v37, %v1282_v14  ;;  %v422_v39 = vsel %vm421_vm15, %v1236_v38, %v418_v5  ;;  %vm460_vm3 = vweird.f32 %v730_v37  ;;  %vm1351_vm5 = vmor %vm409_vm4, %vm410_vm2 }
 0x164   :  { %v435_v43 = vmul.f32 %v1305_v31, %v434_v48  ;;  %vm459_vm6 = vweird.f32 %v1282_v14  ;;  %v471_v54 = vmul.f32 %v422_v39, %v315_v7  ;;  %vm450_vm7 = vweird.f32 %v1260_v32 }
 0x165   :  { %v432_v20 = vsel %vm431_vm10, %v726_v25, %v428_v12  ;;  %v455_v11 = vmul.f32 %v730_v37, %v454_v10  ;;  %v312_v25 = vld [vmem:[%s1532_s1 + $0x28] sm:$0xff]  ;;  %vm461_vm8 = vmor %vm459_vm6, %vm460_vm3  ;;  %v448_v57 = vmul.f32 %v1260_v32, %v447_v35  ;;  %v412_v14 = vsel %vm1351_vm5, %v1267_v56, %v408_v29  ;;  %v318_v12 = vld [vmem:[%s1532_s1 + $0x58] sm:$0xff] }
 0x166   :  { %v472_v6 = vmul.f32 %v432_v20, %v316_v52  ;;  %v468_v13 = vmul.f32 %v392_v42, %v312_v25  ;;  %v436_v55 = vmul.f32 0.5, %v435_v43  ;;  %vm449_vm9 = vweird.f32 %v1211_v49  ;;  %v317_v49 = vld [vmem:[%s1532_s1 + $0x50] sm:$0xff]  ;;  %v593_v5 = vpop.permute.xlu0 %592 }
 0x167   :  { %508 = vperm.xlu1 %703, %v469_v28   ;;  %v456_v40 = vmul.f32 0.5, %v455_v11  ;;  %vm451_vm10 = vmor %vm449_vm9, %vm450_vm7  ;;  %v470_v52 = vmul.f32 %v412_v14, %v314_v30  ;;  %vm440_vm11 = vweird.f32 %v1305_v31  ;;  %vm439_vm12 = vweird.f32 %v1270_v3  ;;  %v577_v3 = vld [vmem:[%s1531_s2 + $0x50] sm:$0xff] }
 0x168   :  { %523 = vperm.xlu0 %704, %v472_v6   ;;  %v437_v44 = vsub.f32 1.5, %v436_v55  ;;  %v452_v10 = vsel %vm451_vm10, %v1260_v32, %v448_v57  ;;  %vm441_vm13 = vmor %vm439_vm12, %vm440_vm11  ;;  %v578_v32 = vld [vmem:[%s1531_s2 + $0x58] sm:$0xff] }
 0x169   :  { %v457_v4 = vsub.f32 1.5, %v456_v40  ;;  %503 = vperm.xlu2 %702, %v468_v13   ;;  %v474_v56 = vmul.f32 %v452_v10, %v318_v12 }
 0x16a   :  { %v438_v28 = vmul.f32 %v1305_v31, %v437_v44 }
 0x16b   :  { %v458_v38 = vmul.f32 %v730_v37, %v457_v4 }
 0x16c   :  { %v588_v43 = vpop.permute.xlu1 %587 }
 0x16d   :  { %v462_v48 = vsel %vm461_vm8, %v730_v37, %v458_v38  ;;  %v442_v37 = vsel %vm441_vm13, %v1305_v31, %v438_v28  ;;  %v598_v31 = vpop.permute.xlu2 %597 }
 0x16e   :  { %v475_v2 = vmul.f32 %v462_v48, %v319_v26  ;;  %v473_v20 = vmul.f32 %v442_v37, %v317_v49  ;;  %v608_v11 = vpop.permute.xlu0 %607 }
 0x16f   :  { %518 = vperm.xlu1 %703, %v471_v54  }
 0x170   :  { %538 = vperm.xlu0 %704, %v475_v2  }
 0x171   :  { %513 = vperm.xlu2 %702, %v470_v52  }
 0x174   :  { %v603_v42 = vpop.permute.xlu1 %602 }
 0x175   :  { %v1388_v6 = vpop.permute.xlu2 %612 }
 0x176   :  { %v1394_v39 = vpop.permute.xlu0 %622 }
 0x177   :  { %533 = vperm.xlu1 %703, %v474_v56  }
 0x178   :  { %637 = vperm.xlu0 %704, %v578_v32  }
 0x179   :  { %528 = vperm.xlu2 %702, %v473_v20  }
 0x17d   :  { %v1390_v23 = vpop.permute.xlu2 %627 }
 0x17f   :  { %632 = vperm.xlu1 %703, %v577_v3  }
 0x181   :  { %642 = vperm.xlu2 %702, %v579_v47  }
 0x1b3   :  { %v484_v25 = vpop.permute.xlu2 %483 }
 0x1b4   :  { %v542_v40 = vmul.f32 %v484_v25, %v946_v16  ;;  %v555_v35 = vmul.f32 %v484_v25, %v1053_v22  ;;  %v618_v22 = vpop.permute.xlu1 %617 }
 0x1b6   :  { %v646_v13 = vadd.f32 %v588_v43, %v542_v40  ;;  %v659_v7 = vadd.f32 %v588_v43, %v555_v35 }
 0x1b8   :  { %672 = vst.msk [vmem:[%s1533_s3 + $0x8] sm:$0xff] %vm40_vm0, %v646_v13 }
 0x1b9   :  { %685 = vst.msk [vmem:[%s1533_s3 + $0x70] sm:$0xff] %vm40_vm0, %v659_v7 }
 0x1bb   :  { %v494_v55 = vpop.permute.xlu2 %493 }
 0x1bc   :  { %v544_v4 = vmul.f32 %v494_v55, %v968_v45  ;;  %v557_v16 = vmul.f32 %v494_v55, %v1044_v61 }
 0x1be   :  { %v648_v29 = vadd.f32 %v598_v31, %v544_v4  ;;  %v661_v18 = vadd.f32 %v598_v31, %v557_v16 }
 0x1c0   :  { %674 = vst.msk [vmem:[%s1533_s3 + $0x18] sm:$0xff] %vm40_vm0, %v648_v29 }
 0x1c1   :  { %687 = vst.msk [vmem:[%s1533_s3 + $0x80] sm:$0xff] %vm40_vm0, %v661_v18 }
 0x1c2   :  { %v489_v54 = vpop.permute.xlu0 %488 }
 0x1c3   :  { %v543_v26 = vmul.f32 %v489_v54, %v971_v46  ;;  %v556_v45 = vmul.f32 %v489_v54, %v1027_v19  ;;  %v504_v38 = vpop.permute.xlu2 %503 }
 0x1c4   :  { %v546_v44 = vmul.f32 %v504_v38, %v992_v60  ;;  %v559_v30 = vmul.f32 %v504_v38, %v1047_v1  ;;  %v479_v14 = vpop.permute.xlu1 %478 }
 0x1c5   :  { %v647_v61 = vadd.f32 %v593_v5, %v543_v26  ;;  %v660_v57 = vadd.f32 %v593_v5, %v556_v45  ;;  %v541_v46 = vmul.f32 %v479_v14, %v950_v17  ;;  %v554_v19 = vmul.f32 %v479_v14, %v1024_v0 }
 0x1c6   :  { %v650_v48 = vadd.f32 %v608_v11, %v546_v44  ;;  %v663_v2 = vadd.f32 %v608_v11, %v559_v30 }
 0x1c7   :  { %673 = vst.msk [vmem:[%s1533_s3 + $0x10] sm:$0xff] %vm40_vm0, %v647_v61  ;;  %v645_v60 = vadd.f32 %v583_v50, %v541_v46  ;;  %v658_v1 = vadd.f32 %v583_v50, %v554_v19 }
 0x1c8   :  { %686 = vst.msk [vmem:[%s1533_s3 + $0x78] sm:$0xff] %vm40_vm0, %v660_v57 }
 0x1c9   :  { %676 = vst.msk [vmem:[%s1533_s3 + $0x28] sm:$0xff] %vm40_vm0, %v650_v48 }
 0x1ca   :  { %689 = vst.msk [vmem:[%s1533_s3 + $0x90] sm:$0xff] %vm40_vm0, %v663_v2 }
 0x1cb   :  { %671 = vst.msk [vmem:[%s1533_s3] sm:$0xff] %vm40_vm0, %v645_v60  ;;  %v514_v17 = vpop.permute.xlu2 %513 }
 0x1cc   :  { %684 = vst.msk [vmem:[%s1533_s3 + $0x68] sm:$0xff] %vm40_vm0, %v658_v1  ;;  %v548_v0 = vmul.f32 %v514_v17, %v986_v21  ;;  %v561_v52 = vmul.f32 %v514_v17, %v1094_v8 }
 0x1ce   :  { %v652_v12 = vadd.f32 %v618_v22, %v548_v0  ;;  %v665_v10 = vadd.f32 %v618_v22, %v561_v52 }
 0x1d0   :  { %678 = vst.msk [vmem:[%s1533_s3 + $0x38] sm:$0xff] %vm40_vm0, %v652_v12 }
 0x1d1   :  { %v499_v28 = vpop.permute.xlu1 %498  ;;  %691 = vst.msk [vmem:[%s1533_s3 + $0xa0] sm:$0xff] %vm40_vm0, %v665_v10 }
 0x1d2   :  { %v545_v56 = vmul.f32 %v499_v28, %v964_v41  ;;  %v558_v49 = vmul.f32 %v499_v28, %v1072_v27 }
 0x1d3   :  { %v529_v47 = vpop.permute.xlu2 %528 }
 0x1d4   :  { %v649_v21 = vadd.f32 %v603_v42, %v545_v56  ;;  %v662_v37 = vadd.f32 %v603_v42, %v558_v49  ;;  %v564_v55 = vmul.f32 %v529_v47, %v1113_v53 }
 0x1d6   :  { %675 = vst.msk [vmem:[%s1533_s3 + $0x20] sm:$0xff] %vm40_vm0, %v649_v21 }
 0x1d7   :  { %688 = vst.msk [vmem:[%s1533_s3 + $0x88] sm:$0xff] %vm40_vm0, %v662_v37 }
 0x1d9   :  { %v509_v41 = vpop.permute.xlu1 %508 }
 0x1da   :  { %v547_v27 = vmul.f32 %v509_v41, %v989_v59  ;;  %v560_v8 = vmul.f32 %v509_v41, %v1063_v9  ;;  %v524_v32 = vpop.permute.xlu0 %523 }
 0x1db   :  { %v550_v20 = vmul.f32 %v524_v32, %v1011_v63  ;;  %v563_v3 = vmul.f32 %v524_v32, %v1086_v33  ;;  %v643_v42 = vpop.permute.xlu2 %642 }
 0x1dc   :  { %v651_v50 = vadd.f32 %v1388_v6, %v547_v27  ;;  %v664_v31 = vadd.f32 %v1388_v6, %v560_v8 }
 0x1dd   :  { %v654_v5 = vadd.f32 %v1390_v23, %v550_v20  ;;  %v667_v43 = vadd.f32 %v1390_v23, %v563_v3 }
 0x1de   :  { %677 = vst.msk [vmem:[%s1533_s3 + $0x30] sm:$0xff] %vm40_vm0, %v651_v50 }
 0x1df   :  { %690 = vst.msk [vmem:[%s1533_s3 + $0x98] sm:$0xff] %vm40_vm0, %v664_v31 }
 0x1e0   :  { %680 = vst.msk [vmem:[%s1533_s3 + $0x48] sm:$0xff] %vm40_vm0, %v654_v5 }
 0x1e1   :  { %693 = vst.msk [vmem:[%s1533_s3 + $0xb0] sm:$0xff] %vm40_vm0, %v667_v43  ;;  %v519_v59 = vpop.permute.xlu1 %518 }
 0x1e2   :  { %v549_v63 = vmul.f32 %v519_v59, %v1014_v51  ;;  %v562_v9 = vmul.f32 %v519_v59, %v1066_v24  ;;  %v539_v23 = vpop.permute.xlu0 %538 }
 0x1e3   :  { %v553_v11 = vmul.f32 %v539_v23, %v1104_v58  ;;  %v566_v25 = vmul.f32 %v539_v23, %v1107_v36 }
 0x1e4   :  { %v653_v33 = vadd.f32 %v1394_v39, %v549_v63  ;;  %v666_v6 = vadd.f32 %v1394_v39, %v562_v9  ;;  %v551_v39 = vmul.f32 %v529_v47, %v1008_v62 }
 0x1e5   :  { %v657_v51 = vadd.f32 %v643_v42, %v553_v11  ;;  %v670_v24 = vadd.f32 %v643_v42, %v566_v25 }
 0x1e6   :  { %679 = vst.msk [vmem:[%s1533_s3 + $0x40] sm:$0xff] %vm40_vm0, %v653_v33 }
 0x1e7   :  { %692 = vst.msk [vmem:[%s1533_s3 + $0xa8] sm:$0xff] %vm40_vm0, %v666_v6 }
 0x1e8   :  { %683 = vst.msk [vmem:[%s1533_s3 + $0x60] sm:$0xf] %vm77_vm1, %v657_v51 }
 0x1e9   :  { %v534_v58 = vpop.permute.xlu1 %533  ;;  %696 = vst.msk [vmem:[%s1533_s3 + $0xc8] sm:$0xf] %vm77_vm1, %v670_v24 }
 0x1ea   :  { %v552_v36 = vmul.f32 %v534_v58, %v1038_v15  ;;  %v565_v40 = vmul.f32 %v534_v58, %v1089_v34  ;;  %v638_v35 = vpop.permute.xlu0 %637 }
 0x1ec   :  { %v656_v13 = vadd.f32 %v638_v35, %v552_v36  ;;  %v669_v7 = vadd.f32 %v638_v35, %v565_v40 }
 0x1ee   :  { %682 = vst.msk [vmem:[%s1533_s3 + $0x58] sm:$0xff] %vm40_vm0, %v656_v13 }
 0x1ef   :  { %695 = vst.msk [vmem:[%s1533_s3 + $0xc0] sm:$0xff] %vm40_vm0, %v669_v7 }
 0x1f1   :  { %v633_v15 = vpop.permute.xlu1 %632 }
 0x1f2   :  { %v655_v4 = vadd.f32 %v633_v15, %v551_v39  ;;  %v668_v34 = vadd.f32 %v633_v15, %v564_v55 }
 0x1f4   :  { %681 = vst.msk [vmem:[%s1533_s3 + $0x50] sm:$0xff] %vm40_vm0, %v655_v4 }
 0x1f5   :  { %694 = vst.msk [vmem:[%s1533_s3 + $0xb8] sm:$0xff] %vm40_vm0, %v668_v34 }

</bundles_post_ra>
